<compile_context>
chip_gen: v7x
topology: tpu7x:2x2x1
jax: 0.10.0
libtpu: 0.0.40
codegen_flags: <defaults>
</compile_context>

<pallas_src>
import functools

import jax
import jax.numpy as jnp
from jax import lax
from jax.experimental import pallas as pl
from jax.experimental.pallas import tpu as pltpu

W = 125        # fixed by the module (rearrange w=125)
C = 8          # fixed by the module (rearrange c=8)


def _restruct_kernel_bf16(sel_ref, x_ref, o_ref):
    # sel_ref: (W*C, W) resident one-hot selection matrix (bf16, exactly {0,1})
    # x_ref:   (TH, W*C) block of the squeezed image (bf16)
    # o_ref:   (TH, W)   output block
    # bf16 value x exact {0,1} with f32 accumulation is exact in a single pass.
    o_ref[...] = jnp.dot(
        x_ref[...], sel_ref[...], preferred_element_type=jnp.float32
    ).astype(o_ref.dtype)


def _restruct_kernel_f32(sel_ref, x_ref, o_ref):
    # sel_ref: (W*C, W) resident one-hot selection matrix (bf16, exactly {0,1})
    # x_ref:   (TH, W*C) block of the squeezed image (f32)
    # o_ref:   (TH, W)   output block
    # Exact 3-term bf16 split of x (x == x0 + x1 + x2 bit-exactly), three
    # DEFAULT-precision MXU passes accumulated in f32.  Same MXU cost as the
    # old precision=HIGH, but bit-exact.
    x = x_ref[...]
    sel = sel_ref[...]

    x0 = x.astype(jnp.bfloat16)
    acc = jnp.dot(x0, sel, preferred_element_type=jnp.float32)

    r = x - x0.astype(jnp.float32)
    x1 = r.astype(jnp.bfloat16)
    acc += jnp.dot(x1, sel, preferred_element_type=jnp.float32)

    x2 = (r - x1.astype(jnp.float32)).astype(jnp.bfloat16)
    acc += jnp.dot(x2, sel, preferred_element_type=jnp.float32)

    o_ref[...] = acc.astype(o_ref.dtype)


def _round_up(a, b):
    return (a + b - 1) // b * b


@functools.partial(jax.jit, static_argnames=("tile_h",))
def restruct_forward(img, idx, tile_h=2048):
    """img squeezes to (H, W*C); idx selects one of the 8 interleaved channels.

    Returns (1, H, W) == rearrange(squeeze(img), 'h (w c) -> c h w', w=125, c=8)[idx][None].
    """
    x = jnp.squeeze(img)                       # matches torch.squeeze semantics
    if x.ndim != 2:
        raise ValueError(f"squeeze(img) must be 2-D (H, {W*C}), got {x.shape}")
    H, WC = x.shape
    if WC != W * C:
        raise ValueError(f"last axis must be {W*C}, got {WC}")

    if isinstance(idx, int) and not (0 <= idx < C):
        raise IndexError(f"idx must be in [0, {C}), got {idx}")
    # TODO(synk): a traced idx outside [0, 8) silently yields an all-zero
    # output instead of raising like torch indexing.

    # --- one-hot selection matrix (bf16 is exact for {0,1}), built once ------
    # sel[k, w] = 1.0 iff k == w*C + idx
    idx_i = jnp.asarray(idx, jnp.int32)
    k_iota = lax.broadcasted_iota(jnp.int32, (W * C, W), 0)
    w_iota = lax.broadcasted_iota(jnp.int32, (W * C, W), 1)
    sel = (k_iota == (w_iota * C + idx_i)).astype(jnp.bfloat16)

    # --- dtype branch --------------------------------------------------------
    out_dtype = x.dtype
    if x.dtype == jnp.bfloat16:
        kernel = _restruct_kernel_bf16
        cap = 2048            # 2x(4.1 MB x) + 2x(0.5 MB out) + sel ~ 9.7 MiB
    else:
        if x.dtype != jnp.float32:
            # TODO(synk): exact only for dtypes embeddable in f32 (f16, bf16, small ints).
            x = x.astype(jnp.float32)
        kernel = _restruct_kernel_f32
        cap = 1024            # pipeline ~9.7 MiB + split temporaries ~10 MiB < 32 MiB limit

    # --- row tiling: big tiles, >= 2 grid steps per TensorCore (v7x) ---------
    tile = min(int(tile_h), cap, _round_up(pl.cdiv(H, 4), 8))
    tile = max(8, _round_up(tile, 8))
    grid = pl.cdiv(H, tile)                    # no padding: ragged last block is fine

    y = pl.pallas_call(
        kernel,
        out_shape=jax.ShapeDtypeStruct((H, W), out_dtype),
        grid_spec=pltpu.PrefetchScalarGridSpec(
            num_scalar_prefetch=0,
            grid=(grid,),
            in_specs=[
                # sel: same block index every step -> stays resident in VMEM.
                pl.BlockSpec((W * C, W), lambda i: (0, 0)),
                # image rows: streamed, double-buffered by the pipeline.
                pl.BlockSpec((tile, W * C), lambda i: (i, 0)),
            ],
            out_specs=pl.BlockSpec((tile, W), lambda i: (i, 0)),
        ),
        compiler_params=pltpu.CompilerParams(
            dimension_semantics=("parallel",),
            vmem_limit_bytes=32 * 1024 * 1024,   # v5e default is 16 MiB; safe on v6e/v7x too
        ),
    )(sel, x)

    return y[None]                              # (1, H, W) == unsqueeze(0); free reshape


if __name__ == "__main__":
    key = jax.random.PRNGKey(0)
    H = 16
    idx = 3  # the module's __init__(idx)

    # Stacked image with a leading squeeze-able dim, as torch.squeeze implies.
    img = jax.random.normal(key, (1, H, W * C), dtype=jnp.float32)

    # --- f32 path (3-term bf16 split, should be bit-exact) -------------------
    out = jax.block_until_ready(restruct_forward(img, idx))
    xs = jnp.squeeze(img)
    ref = jnp.transpose(xs.reshape(H, W, C), (2, 0, 1))[idx][None]
    assert out.shape == (1, H, W), out.shape
    assert jnp.allclose(out, ref, rtol=1e-6, atol=1e-6), "f32 path mismatch vs reference"

    # --- bf16 path (single-pass matmul, exact) --------------------------------
    img_bf = img.astype(jnp.bfloat16)
    out_bf = jax.block_until_ready(restruct_forward(img_bf, idx))
    ref_bf = jnp.transpose(jnp.squeeze(img_bf).reshape(H, W, C), (2, 0, 1))[idx][None]
    assert out_bf.dtype == jnp.bfloat16 and out_bf.shape == (1, H, W)
    assert jnp.allclose(out_bf.astype(jnp.float32), ref_bf.astype(jnp.float32),
                        rtol=1e-6, atol=1e-6), "bf16 path mismatch vs reference"

    print("KERNEL_OK")
</pallas_src>

<mosaic_0001>
module attributes {stable_mosaic.version = 11 : i64} {
  func.func @_restruct_kernel_f32(%arg0: i32, %arg1: memref<1000x125xbf16, #tpu.memory_space<vmem>>, %arg2: memref<8x1000xf32, #tpu.memory_space<vmem>>, %arg3: memref<8x125xf32, #tpu.memory_space<vmem>>) attributes {dimension_semantics = [#tpu.dimension_semantics<parallel>], iteration_bounds = array<i64: 2>, scalar_prefetch = 0 : i64, scratch_operands = 0 : i64, tpu.core_type = #tpu.core_type<tc>, window_params = [{pipeline_mode = #tpu.pipeline_mode<synchronous>, transform_indices = @transform_0, window_bounds = array<i64: 1000, 125>}, {transform_indices = @transform_1, window_bounds = array<i64: 8, 1000>}, {transform_indices = @transform_2, window_bounds = array<i64: 8, 125>}]} {
    %c0 = arith.constant 0 : index
    %c0_0 = arith.constant 0 : index
    %0 = vector.load %arg2[%c0, %c0_0] : memref<8x1000xf32, #tpu.memory_space<vmem>>, vector<8x1000xf32>
    %c0_1 = arith.constant 0 : index
    %c0_2 = arith.constant 0 : index
    %1 = vector.load %arg1[%c0_1, %c0_2] : memref<1000x125xbf16, #tpu.memory_space<vmem>>, vector<1000x125xbf16>
    %2 = arith.truncf %0 : vector<8x1000xf32> to vector<8x1000xbf16>
    %cst = arith.constant dense<0.000000e+00> : vector<8x125xf32>
    %3 = tpu.matmul %2, %1, %cst {dimension_numbers = #tpu.dot_dimension_numbers<[1], [0], [0], [1], [0, 0, 1, 1], [], []>} : vector<8x1000xbf16>, vector<1000x125xbf16>, vector<8x125xf32> -> vector<8x125xf32>
    %4 = arith.extf %2 : vector<8x1000xbf16> to vector<8x1000xf32>
    %5 = arith.subf %0, %4 : vector<8x1000xf32>
    %6 = arith.truncf %5 : vector<8x1000xf32> to vector<8x1000xbf16>
    %cst_3 = arith.constant dense<0.000000e+00> : vector<8x125xf32>
    %7 = tpu.matmul %6, %1, %cst_3 {dimension_numbers = #tpu.dot_dimension_numbers<[1], [0], [0], [1], [0, 0, 1, 1], [], []>} : vector<8x1000xbf16>, vector<1000x125xbf16>, vector<8x125xf32> -> vector<8x125xf32>
    %8 = arith.addf %3, %7 : vector<8x125xf32>
    %9 = arith.extf %6 : vector<8x1000xbf16> to vector<8x1000xf32>
    %10 = arith.subf %5, %9 : vector<8x1000xf32>
    %11 = arith.truncf %10 : vector<8x1000xf32> to vector<8x1000xbf16>
    %cst_4 = arith.constant dense<0.000000e+00> : vector<8x125xf32>
    %12 = tpu.matmul %11, %1, %cst_4 {dimension_numbers = #tpu.dot_dimension_numbers<[1], [0], [0], [1], [0, 0, 1, 1], [], []>} : vector<8x1000xbf16>, vector<1000x125xbf16>, vector<8x125xf32> -> vector<8x125xf32>
    %13 = arith.addf %8, %12 : vector<8x125xf32>
    %c0_5 = arith.constant 0 : index
    %c0_6 = arith.constant 0 : index
    %14 = vector.load %arg3[%c0_5, %c0_6] : memref<8x125xf32, #tpu.memory_space<vmem>>, vector<8x125xf32>
    tpu.vector_store %arg3[%c0_5, %c0_6], %13 {strides = array<i32>} : memref<8x125xf32, #tpu.memory_space<vmem>>, vector<8x125xf32>,
    return
  }
  func.func @transform_0(%arg0: i32) -> (i32, i32) {
    %c0_i32 = arith.constant 0 : i32
    %c0_i32_0 = arith.constant 0 : i32
    %c0_i32_1 = arith.constant 0 : i32
    return %c0_i32, %c0_i32_0 : i32, i32
  }
  func.func @transform_1(%arg0: i32) -> (i32, i32) {
    %c0_i32 = arith.constant 0 : i32
    %c0_i32_0 = arith.constant 0 : i32
    return %arg0, %c0_i32 : i32, i32
  }
  func.func @transform_2(%arg0: i32) -> (i32, i32) {
    %c0_i32 = arith.constant 0 : i32
    %c0_i32_0 = arith.constant 0 : i32
    return %arg0, %c0_i32 : i32, i32
  }
}

</mosaic_0001>

<bundles_post_ra>
// kernel: restruct_forward.1
= control target key start
LH: loop header
LB: loop body
LE: loop exit
PB: predicated region body
PF: predicated region fallthrough
CT: control target
= control target key end

     0   :  { %7 = vsyncpa [#allocation3], 0  ;;  %s2517_s0 = inlined_call_operand.vmem [shape: bf16[1000,125], index: 0, kind: input, shape index: {}]   ;;  %s2518_s1 = inlined_call_operand.vmem [shape: f32[16,1000], index: 1, kind: input, shape index: {}]   ;;  %s2519_s2 = inlined_call_operand.hbm [shape: f32[16,125], index: 2, kind: output, shape index: {}]  }
   0x1   :  { %9 = vsyncpa [#allocation3 + $0x1], 0  ;;  %s1750_s9 = smov 0   ;;  %s1752_s10 = smov 0  }
   0x2   :  { %s1754_s11 = smov 0   ;;  %s1756_s12 = smov 0  }
   0x3 LB: > { %s1771_s13 = sadd.s32 4294967295, %s1731_s12   ;;  %s1277_s14 = sadd.s32 4294967294, %s1731_s12   ;;  %s1731_s12 = sphi %s1756_s12, %s2595_s12   ;;  %s1727_s11 = sphi %s1754_s11, %s2594_s11   ;;  %s1723_s10 = sphi %s1752_s10, %s2593_s10   ;;  %s1719_s9 = sphi %s1750_s9, %s2592_s9  }
   0x4   : > { %s1775_s15 = sadd.s32 1, %s1731_s12   ;;  %s69_s16 = sadd.s32 1, %s1727_s11 }
   0x5   : > { %s66_s17 = ssub.s32 %s1731_s12, %s1775_s15  ;;  %p79_p0 = scmp.ne.s32.totalorder %s1727_s11, %s1723_s10 }
   0x6   : > { %p67_p1 = scmp.eq.s32.totalorder %s66_s17, 0  ;;  %p80_p2 = scmp.eq.s32.totalorder %s1771_s13, 1 }
   0x7   : > { %p85_p3 = scmp.ne.s32.totalorder %s1723_s10, %s1719_s9  ;;  %p86_p4 = scmp.eq.s32.totalorder %s1277_s14, 1 }
   0x8   : > { %s1786_s18 = scalar_select %p67_p1, %s1727_s11, %s69_s16  }
   0x9   : > { %p1788_p5 = por %p80_p2, %p79_p0  ;;  %p1792_p6 = por %p86_p4, %p85_p3 }
   0xa   : > { %p1280_p7 = scmp.ge.s32.totalorder %s1731_s12, 1  ;;  %p115_p8 = scmp.lt.s32.totalorder %s1731_s12, 3 }
   0xc   : > { %p116_p9 = pnand %p1280_p7, %p115_p8 }
   0xe   : > { %119 = sbr.rel (%p116_p9) target bundleno = 494 (0x1ee), region = 28 }
  0x15   : > { %v1801_v0 = vld [vmem:[%s2517_s0 + $0x40] sm:$0xff]   ;;  %v2521_v1 = vmov 0   ;;  %v1819_v4 = vld [vmem:[%s2517_s0 + $0x48] sm:$0xff]   ;;  %v1837_v7 = vld [vmem:[%s2517_s0 + $0x50] sm:$0xff]   ;;  %p137_p10 = scmp.lt.s32.totalorder %s1771_s13, 1  ;;  %vm683_vm0 = vcmask 850944  }
  0x16   : > { %811 = vmatprep.subr.bf16.mxu1 %v2521_v1  ;;  %v1807_v2 = vld [vmem:[%s2517_s0 + $0x180] sm:$0xff]   ;;  %1355 = vmatprep.subr.bf16.mxu0 %v1801_v0  ;;  %v1826_v5 = vld [vmem:[%s2517_s0 + $0x188] sm:$0xff]   ;;  %v1843_v8 = vld [vmem:[%s2517_s0 + $0x190] sm:$0xff]   ;;  %vm687_vm1 = vcmask 1043456   ;;  %s134_s21 = sand.u32 1, %s1723_s10   ;;  %s1351_s23 = sshll.u32 %s1771_s13, 7 }
  0x17   : > { %v1813_v3 = vld [vmem:[%s2517_s0] sm:$0xff]   ;;  %812 = vmatpush1.bf16.msra.mxu1 %v1807_v2  ;;  %v1832_v6 = vld [vmem:[%s2517_s0 + $0x8] sm:$0xff]   ;;  %v1850_v9 = vld [vmem:[%s2517_s0 + $0x10] sm:$0xff]   ;;  %s138_s28 = scalar_select %p137_p10, %s1771_s13, 1  ;;  %vm1202_vm2 = vcmask 1022976  }
  0x18   : > { %1356 = vmatpush3.bf16.msra.mxu0 %v1813_v3  ;;  %813 = vmatprep.subr.bf16.mxu1 %v2521_v1  ;;  %v1856_v10 = vld [vmem:[%s2517_s0 + $0x58] sm:$0xff]   ;;  %v1876_v13 = vld [vmem:[%s2517_s0 + $0x60] sm:$0xff]   ;;  %v1896_v16 = vld [vmem:[%s2517_s0 + $0x68] sm:$0xff]   ;;  %s1281_s22 = sshll.u32 %s134_s21, 3  ;;  %s2475_s29 = scalar_lea.hbm %s2519_s2, %s1351_s23 }
  0x19   : > { %1357 = vmatprep.subr.bf16.mxu0 %v1819_v4  ;;  %v1863_v11 = vld [vmem:[%s2517_s0 + $0x198] sm:$0xff]   ;;  %v1883_v14 = vld [vmem:[%s2517_s0 + $0x1a0] sm:$0xff]   ;;  %s1354_s7 = sshll.u32 %s138_s28, 6  ;;  %v1902_v17 = vld [vmem:[%s2517_s0 + $0x1a8] sm:$0xff]   ;;  %s136_s24 = scalar_lea.vmem [#allocation2], %s1281_s22 }
  0x1a   : > { %v1870_v12 = vld [vmem:[%s2517_s0 + $0x18] sm:$0xff]   ;;  %v1890_v15 = vld [vmem:[%s2517_s0 + $0x20] sm:$0xff]   ;;  %v1909_v18 = vld [vmem:[%s2517_s0 + $0x28] sm:$0xff]   ;;  %s1920_s25 = scalar_lea.vmem %s2518_s1, %s1354_s7  ;;  %s1218_s26 = sshll.u32 %s136_s24, 4  ;;  %s2477_s26 = int_to_ptr.vmem [resolvable:$true] %s1218_s26 }
  0x1b   : > { %814 = vmatpush1.bf16.msra.mxu1 %v1826_v5  ;;  %v1915_v19 = vld [vmem:[%s2517_s0 + $0x70] sm:$0xff]   ;;  %v144_v22 = vld [vmem:[%s1920_s25 + $0x8] sm:$0xff]  ;;  %v1940_v23 = vld [vmem:[%s2517_s0 + $0x78] sm:$0xff]   ;;  %s1205_s13 = scalar_lea.sflag [#allocation3], %s134_s21  ;;  %s1669_s30 = scalar_lea.vmem %s2477_s26, 128 }
  0x1c   : > { %1358 = vmatpush3.bf16.msra.mxu0 %v1832_v6  ;;  %815 = vmatprep.subr.bf16.mxu1 %v2521_v1  ;;  %v1925_v20 = vld [vmem:[%s2517_s0 + $0x1b0] sm:$0xff]   ;;  %v1942_v24 = vpack.c.bf16 %v144_v22, %v144_v22  ;;  %v143_v25 = vld [vmem:[%s1920_s25] sm:$0xff]  ;;  %v1949_v26 = vld [vmem:[%s2517_s0 + $0x1b8] sm:$0xff]   ;;  %p1670_p11 = scmp.ne.s32.totalorder %s2477_s26, %s1669_s30  ;;  %s1734_s3 = smov [#allocation2]  }
  0x1d   : > { %1359 = vmatprep.subr.bf16.mxu0 %v1837_v7  ;;  %v1931_v21 = vld [vmem:[%s2517_s0 + $0x30] sm:$0xff]   ;;  %v1952_v28 = vpack.c.bf16 %v143_v25, %v143_v25  ;;  %v1959_v29 = vld [vmem:[%s2517_s0 + $0x38] sm:$0xff]   ;;  %v1967_v31 = vld [vmem:[%s2517_s0 + $0xc0] sm:$0xff]   ;;  %s1673_s4 = sshll.u32 %s1734_s3, 4  ;;  %s1674_s4 = int_to_ptr.vmem [resolvable:$false] %s1673_s4 }
  0x1e   : > { %v285_v27 = vunpack.c.l.bf16 %v1942_v24  ;;  %2547 = vst [vmem:[#allocation5_spill] sm:$0xff] %v1967_v31  ;;  %v1978_v34 = vld [vmem:[%s2517_s0 + $0x1c0] sm:$0xff]   ;;  %v1998_v38 = vld [vmem:[%s2517_s0 + $0xc8] sm:$0xff]   ;;  %v2018_v41 = vld [vmem:[%s2517_s0 + $0xd0] sm:$0xff]   ;;  %p1671_p12 = pnand %p1670_p11, %p1788_p5  ;;  %s1675_s5 = scalar_lea.vmem %s1674_s4, 256 }
  0x1f   : > { %816 = vmatpush1.bf16.msra.mxu1 %v1843_v8  ;;  %v284_v32 = vunpack.c.l.bf16 %v1952_v28  ;;  %v1987_v36 = vld [vmem:[%s2517_s0 + $0x80] sm:$0xff]   ;;  %2549 = vst [vmem:[#allocation7_spill] sm:$0xff] %v1998_v38  ;;  %v2005_v39 = vld [vmem:[%s2517_s0 + $0x1c8] sm:$0xff]   ;;  %2551 = vst [vmem:[#allocation9_spill] sm:$0xff] %v2018_v41  ;;  %p1676_p0 = scmp.lt.s32.totalorder %s2477_s26, %s1674_s4  ;;  %p1677_p1 = scmp.lt.s32.totalorder %s1675_s5, %s1669_s30 }
  0x20   : > { %1360 = vmatpush3.bf16.msra.mxu0 %v1850_v9  ;;  %817 = vmatprep.subr.bf16.mxu1 %v2521_v1  ;;  %v1962_v30 = vsub.f32 %v144_v22, %v285_v27  ;;  %2548 = vst [vmem:[#allocation6_spill] sm:$0xff] %v1987_v36  ;;  %v2012_v40 = vld [vmem:[%s2517_s0 + $0x88] sm:$0xff]   ;;  %v2024_v42 = vld [vmem:[%s2517_s0 + $0x1d0] sm:$0xff]   ;;  %v2037_v44 = vld [vmem:[%s2517_s0 + $0xd8] sm:$0xff]   ;;  %p1672_p13 = pneg %p1671_p12 }
  0x21   : > { %1361 = vmatprep.subr.bf16.mxu0 %v1856_v10  ;;  %v1980_v35 = vsub.f32 %v143_v25, %v284_v32  ;;  %2550 = vst [vmem:[#allocation8_spill] sm:$0xff] %v2012_v40  ;;  %2552 = vst [vmem:[#allocation10_spill] sm:$0xff] %v2024_v42  ;;  %v2031_v43 = vld [vmem:[%s2517_s0 + $0x90] sm:$0xff]   ;;  %v2043_v45 = vld [vmem:[%s2517_s0 + $0x1d8] sm:$0xff]   ;;  %p1678_p2 = por %p1677_p1, %p1676_p0 }
  0x22   : > { %v1973_v33 = vpack.c.bf16 %v1962_v30, %v1962_v30  ;;  %2553 = vst [vmem:[#allocation11_spill] sm:$0xff] %v2031_v43  ;;  %2554 = vst [vmem:[#allocation12_spill] sm:$0xff] %v2037_v44  ;;  %v2050_v46 = vld [vmem:[%s2517_s0 + $0x98] sm:$0xff]   ;;  %v2056_v47 = vld [vmem:[%s2517_s0 + $0xe0] sm:$0xff]  }
  0x23   : > { %818 = vmatpush1.bf16.msra.mxu1 %v1863_v11  ;;  %v1993_v37 = vpack.c.bf16 %v1980_v35, %v1980_v35  ;;  %2555 = vst [vmem:[#allocation13_spill] sm:$0xff] %v2043_v45  ;;  %v150_v48 = vld [vmem:[%s1920_s25 + $0x38] sm:$0xff]  ;;  %v2062_v49 = vld [vmem:[%s2517_s0 + $0x1e0] sm:$0xff]   ;;  %v149_v51 = vld [vmem:[%s1920_s25 + $0x30] sm:$0xff]  ;;  %p1679_p3 = pnand %p1678_p2, %p1672_p13 }
  0x24   : > { %1362 = vmatpush3.bf16.msra.mxu0 %v1870_v12  ;;  %819 = vmatprep.subr.bf16.mxu1 %v2521_v1  ;;  %2556 = vst [vmem:[#allocation14_spill] sm:$0xff] %v2062_v49  ;;  %v2064_v50 = vpack.c.bf16 %v150_v48, %v150_v48  ;;  %v2071_v52 = vld [vmem:[%s2517_s0 + $0xa0] sm:$0xff]   ;;  %v2073_v53 = vpack.c.bf16 %v149_v51, %v149_v51  ;;  %v146_v55 = vld [vmem:[%s1920_s25 + $0x18] sm:$0xff]  ;;  %v145_v56 = vld [vmem:[%s1920_s25 + $0x10] sm:$0xff] }
  0x25   : > { %1363 = vmatprep.subr.bf16.mxu0 %v1876_v13  ;;  %723 = vmatprep.mubr.bf16.mxu0 %v1973_v33  ;;  %2557 = vst [vmem:[#allocation15_spill] sm:$0xff] %v2071_v52  ;;  %v2084_v57 = vld [vmem:[%s2517_s0 + $0xe8] sm:$0xff]   ;;  %v279_v58 = vpack.c.bf16 %v146_v55, %v146_v55  ;;  %v2098_v22 = vpack.c.bf16 %v145_v56, %v145_v56  ;;  %v1649_v25 = vld [vmem:[%s2517_s0 + $0x1f0] ss:$0 sps:$4 sm:$0xff]  }
  0x26   : > { %2558 = vst [vmem:[#allocation16_spill] sm:$0xff] %v2073_v53  ;;  %v291_v54 = vunpack.c.l.bf16 %v2064_v50  ;;  %2559 = vst [vmem:[#allocation17_spill] sm:$0xff] %v2084_v57  ;;  %v2089_v59 = vld [vmem:[%s2517_s0 + $0x1e8] sm:$0xff]   ;;  %v290_v61 = vunpack.c.l.bf16 %v2073_v53  ;;  %v2109_v32 = vld [vmem:[%s2517_s0 + $0xf0] sm:$0xff]  }
  0x27   : > { %820 = vmatpush1.bf16.msra.mxu1 %v1883_v14  ;;  %v2096_v62 = vld [vmem:[%s2517_s0 + $0xa8] sm:$0xff]   ;;  %v287_v63 = vunpack.c.l.bf16 %v279_v58  ;;  %2561 = vst [vmem:[#allocation19_spill] sm:$0xff] %v2109_v32 }
  0x28   : > { %1364 = vmatpush3.bf16.msra.mxu0 %v1890_v15  ;;  %821 = vmatprep.subr.bf16.mxu1 %v2521_v1  ;;  %v299_v60 = vsub.f32 %v150_v48, %v291_v54  ;;  %2560 = vst [vmem:[#allocation18_spill] sm:$0xff] %v2096_v62  ;;  %v2114_v53 = vsub.f32 %v149_v51, %v290_v61  ;;  %v2137_v61 = vld [vmem:[%s2517_s0 + $0xf8] sm:$0xff]  }
  0x29   : > { %1365 = vmatprep.subr.bf16.mxu0 %v1896_v16  ;;  %v2111_v48 = vsub.f32 %v146_v55, %v287_v63  ;;  %v2129_v55 = vld [vmem:[%s2517_s0 + $0xb0] sm:$0xff]   ;;  %2566 = vst [vmem:[#allocation23_spill] sm:$0xff] %v2137_v61 }
  0x2a   : > { %v307_v27 = vpack.c.bf16 %v299_v60, %v299_v60  ;;  %2564 = vst [vmem:[#allocation21_spill] sm:$0xff] %v2129_v55  ;;  %v2142_v63 = vpack.c.bf16 %v2114_v53, %v2114_v53 }
  0x2b   : > { %822 = vmatpush1.bf16.msra.mxu1 %v1902_v17 }
  0x2c   : > { %1366 = vmatpush3.bf16.msra.mxu0 %v1909_v18  ;;  %823 = vmatprep.subr.bf16.mxu1 %v2521_v1  ;;  %v1021_v54 = vunpack.c.l.bf16 %v307_v27 }
  0x2d   : > { %1367 = vmatprep.subr.bf16.mxu0 %v1915_v19  ;;  %1347 = vmatprep.mubr.msk.bf16.mxu1 %vm683_vm0, %v307_v27  ;;  %v1014_v27 = vunpack.c.l.bf16 %v1993_v37 }
  0x2e   : > { %v2131_v51 = vsub.f32 %v299_v60, %v1021_v54  ;;  %v2154_v54 = vld [vmem:[%s2517_s0 + $0xb8] sm:$0xff]  }
  0x2f   : > { %824 = vmatpush1.bf16.msra.mxu1 %v1925_v20 }
  0x30   : > { %1368 = vmatpush3.bf16.msra.mxu0 %v1931_v21  ;;  %825 = vmatprep.subr.bf16.mxu1 %v2521_v1  ;;  %2565 = vst [vmem:[#allocation22_spill] sm:$0xff] %v2131_v51 }
  0x31   : > { %1369 = vmatprep.subr.bf16.mxu0 %v1940_v23 }
  0x33   : > { %826 = vmatpush1.bf16.msra.mxu1 %v1949_v26 }
  0x34   : > { %1370 = vmatpush3.bf16.msra.mxu0 %v1959_v29  ;;  %827 = vmatprep.subr.bf16.mxu1 %v2521_v1 }
  0x35   : > { %1377 = vmatprep.subr.bf16.mxu0 %v1967_v31 }
  0x37   : > { %828 = vmatpush1.bf16.msra.mxu1 %v1978_v34  ;;  %724 = vmatmul.mubr.bf16.vlgmr.msra.gmra.mrb[0].mxu0 %v1993_v37 }
  0x38   : > { %1378 = vmatpush3.bf16.msra.mxu0 %v1987_v36  ;;  %829 = vmatprep.subr.bf16.mxu1 %v2521_v1 }
  0x39   : > { %1379 = vmatprep.subr.bf16.mxu0 %v1998_v38 }
  0x3b   : > { %830 = vmatpush1.bf16.msra.mxu1 %v2005_v39 }
  0x3c   : > { %1380 = vmatpush3.bf16.msra.mxu0 %v2012_v40  ;;  %831 = vmatprep.subr.bf16.mxu1 %v2521_v1 }
  0x3d   : > { %1381 = vmatprep.subr.bf16.mxu0 %v2018_v41 }
  0x3f   : > { %832 = vmatpush1.bf16.msra.mxu1 %v2024_v42  ;;  %v2124_v42 = vsel %vm687_vm1, %v1649_v25, 0  ;;  %v1015_v25 = vunpack.c.l.bf16 %v1973_v33  ;;  %v2160_v33 = vld [vmem:[%s2517_s0 + $0x140] sm:$0xff]  }
  0x40   : > { %1382 = vmatpush3.bf16.msra.mxu0 %v2031_v43  ;;  %833 = vmatprep.subr.bf16.mxu1 %v2521_v1  ;;  %2563 = vst [vmem:[#allocation20_spill] sm:$0xff] %v2124_v42 }
  0x41   : > { %1383 = vmatprep.subr.bf16.mxu0 %v2037_v44 }
  0x43   : > { %834 = vmatpush1.bf16.msra.mxu1 %v2043_v45  ;;  %v2562_v45 = vmov 0  }
  0x44   : > { %1384 = vmatpush3.bf16.msra.mxu0 %v2050_v46  ;;  %835 = vmatprep.subr.bf16.mxu1 %v2521_v1 }
  0x45   : > { %1385 = vmatprep.subr.bf16.mxu0 %v2056_v47 }
  0x47   : > { %836 = vmatpush1.bf16.msra.mxu1 %v2062_v49  ;;  %v286_v49 = vunpack.c.l.bf16 %v2098_v22 }
  0x48   : > { %1386 = vmatpush3.bf16.msra.mxu0 %v2071_v52  ;;  %837 = vmatprep.subr.bf16.mxu1 %v2521_v1  ;;  %v2119_v1 = vpack.c.bf16 %v2111_v48, %v2111_v48 }
  0x49   : > { %1387 = vmatprep.subr.bf16.mxu0 %v2084_v57  ;;  %v2146_v60 = vsub.f32 %v145_v56, %v286_v49  ;;  %v2169_v49 = vsub.f32 %v1962_v30, %v1015_v25  ;;  %v2176_v56 = vld [vmem:[%s2517_s0 + $0x100] sm:$0xff]   ;;  %v2186_v30 = vld [vmem:[%s2517_s0 + $0x148] sm:$0xff]  }
  0x4a   : > { %763 = vmatprep.mubr.bf16.mxu0 %v2119_v1  ;;  %v147_v25 = vld [vmem:[%s1920_s25 + $0x20] sm:$0xff] }
  0x4b   : > { %838 = vmatpush1.bf16.msra.mxu1 %v2089_v59  ;;  %v2166_v37 = vpack.c.bf16 %v2146_v60, %v2146_v60  ;;  %2567 = vst [vmem:[#allocation24_spill] sm:$0xff] %v2169_v49 }
  0x4c   : > { %1388 = vmatpush3.bf16.msra.mxu0 %v2096_v62  ;;  %839 = vmatprep.subr.bf16.mxu1 %v2562_v45 }
  0x4d   : > { %1389 = vmatprep.subr.bf16.mxu0 %v2109_v32 }
  0x4f   : > { %840 = vmatpush1.bf16.msra.mxu1 %v2124_v42 }
  0x50   : > { %1390 = vmatpush3.bf16.msra.mxu0 %v2129_v55  ;;  %1443 = vmatprep.subr.bf16.mxu1 %v1967_v31  ;;  %v148_v31 = vld [vmem:[%s1920_s25 + $0x28] sm:$0xff] }
  0x51   : > { %1391 = vmatprep.subr.bf16.mxu0 %v2137_v61 }
  0x52   : > { %844 = vmatmul.mubr.bf16.vlgmr.msra.gmra.mrb[0].mxu1 %v2142_v63 }
  0x53   : > { %1444 = vmatpush3.bf16.msra.mxu1 %v1987_v36  ;;  %926 = vmatprep.mubr.bf16.mxu1 %v279_v58  ;;  %v2180_v36 = vsub.f32 %v1980_v35, %v1014_v27  ;;  %v2188_v58 = vpack.c.bf16 %v148_v31, %v148_v31  ;;  %v2201_v35 = vld [vmem:[%s2517_s0 + $0x108] sm:$0xff]  }
  0x54   : > { %1392 = vmatpush3.bf16.msra.mxu0 %v2154_v54  ;;  %1445 = vmatprep.subr.bf16.mxu1 %v1998_v38  ;;  %v2191_v38 = vpack.c.bf16 %v147_v25, %v147_v25 }
  0x55   : > { %2568 = vst [vmem:[#allocation25_spill] sm:$0xff] %v2180_v36  ;;  %1399 = vmatprep.subr.bf16.mxu0 %v2160_v33  ;;  %v289_v51 = vunpack.c.l.bf16 %v2188_v58  ;;  %v2208_v36 = vld [vmem:[%s2517_s0 + $0x150] sm:$0xff]  }
  0x56   : > { %2569 = vst [vmem:[#allocation26_spill] sm:$0xff] %v2191_v38  ;;  %v288_v27 = vunpack.c.l.bf16 %v2191_v38 }
  0x57   : > { %764 = vmatmul.mubr.bf16.vlgmr.msra.gmra.mrb[4].mxu0 %v2166_v37  ;;  %1446 = vmatpush3.bf16.msra.mxu1 %v2012_v40  ;;  %v297_v40 = vsub.f32 %v148_v31, %v289_v51  ;;  %v2222_v31 = vld [vmem:[%s2517_s0 + $0x158] sm:$0xff]  }
  0x58   : > { %1400 = vmatpush3.bf16.msra.mxu0 %v2176_v56  ;;  %1447 = vmatprep.subr.bf16.mxu1 %v2018_v41  ;;  %v296_v49 = vsub.f32 %v147_v25, %v288_v27  ;;  %v2216_v41 = vld [vmem:[%s2517_s0 + $0x110] sm:$0xff]  }
  0x59   : > { %1401 = vmatprep.subr.bf16.mxu0 %v2186_v30  ;;  %v305_v42 = vpack.c.bf16 %v297_v40, %v297_v40 }
  0x5a   : > { %v304_v38 = vpack.c.bf16 %v296_v49, %v296_v49 }
  0x5b   : > { %1448 = vmatpush3.bf16.msra.mxu1 %v2031_v43  ;;  %803 = vmatprep.mubr.bf16.mxu0 %v305_v42  ;;  %v1019_v51 = vunpack.c.l.bf16 %v305_v42  ;;  %v2240_v42 = vld [vmem:[%s2517_s0 + $0x160] sm:$0xff]  }
  0x5c   : > { %1402 = vmatpush3.bf16.msra.mxu0 %v2201_v35  ;;  %1449 = vmatprep.subr.bf16.mxu1 %v2037_v44  ;;  %v1018_v25 = vunpack.c.l.bf16 %v304_v38  ;;  %v2232_v44 = vld [vmem:[%s2517_s0 + $0x118] sm:$0xff]  }
  0x5d   : > { %1403 = vmatprep.subr.bf16.mxu0 %v2208_v36  ;;  %v2225_v27 = vsub.f32 %v297_v40, %v1019_v51  ;;  %v2248_v40 = vld [vmem:[%s2517_s0 + $0x120] sm:$0xff]   ;;  %v2262_v51 = vld [vmem:[%s2517_s0 + $0x128] sm:$0xff]  }
  0x5e   : > { %v2234_v43 = vsub.f32 %v296_v49, %v1018_v25  ;;  %v2254_v49 = vld [vmem:[%s2517_s0 + $0x168] sm:$0xff]   ;;  %v2268_v25 = vld [vmem:[%s2517_s0 + $0x170] sm:$0xff]  }
  0x5f   : > { %1450 = vmatpush3.bf16.msra.mxu1 %v2050_v46 }
  0x60   : > { %1404 = vmatpush3.bf16.msra.mxu0 %v2216_v41  ;;  %1451 = vmatprep.subr.bf16.mxu1 %v2056_v47 }
  0x61   : > { %1405 = vmatprep.subr.bf16.mxu0 %v2222_v31 }
  0x63   : > { %1452 = vmatpush3.bf16.msra.mxu1 %v2071_v52 }
  0x64   : > { %1406 = vmatpush3.bf16.msra.mxu0 %v2232_v44  ;;  %1453 = vmatprep.subr.bf16.mxu1 %v2084_v57  ;;  %v1017_v57 = vunpack.c.l.bf16 %v2119_v1 }
  0x65   : > { %1407 = vmatprep.subr.bf16.mxu0 %v2240_v42 }
  0x66   : > { %v2297_v52 = vsub.f32 %v2111_v48, %v1017_v57  ;;  %v2573_v57 = vld [vmem:[#allocation20_spill] sm:$0xff] }
  0x67   : > { %1454 = vmatpush3.bf16.msra.mxu1 %v2096_v62  ;;  %v2282_v62 = vld [vmem:[%s2517_s0 + $0x178] sm:$0xff]   ;;  %v2574_v48 = vld [vmem:[#allocation16_spill] sm:$0xff] }
  0x68   : > { %1408 = vmatpush3.bf16.msra.mxu0 %v2248_v40  ;;  %1455 = vmatprep.subr.bf16.mxu1 %v2109_v32  ;;  %v2276_v32 = vld [vmem:[%s2517_s0 + $0x130] sm:$0xff]  }
  0x69   : > { %1409 = vmatprep.subr.bf16.mxu0 %v2254_v49 }
  0x6b   : > { %1456 = vmatpush3.bf16.msra.mxu1 %v2129_v55  ;;  %v1016_v55 = vunpack.c.l.bf16 %v2166_v37 }
  0x6c   : > { %1410 = vmatpush3.bf16.msra.mxu0 %v2262_v51  ;;  %1457 = vmatprep.subr.bf16.mxu1 %v2137_v61  ;;  %v2292_v61 = vld [vmem:[%s2517_s0 + $0x138] sm:$0xff]  }
  0x6d   : > { %1411 = vmatprep.subr.bf16.mxu0 %v2268_v25  ;;  %v2303_v1 = vsub.f32 %v2146_v60, %v1016_v55  ;;  %v2575_v55 = vld [vmem:[#allocation24_spill] sm:$0xff]  ;;  %v2576_v60 = vld [vmem:[#allocation26_spill] sm:$0xff] }
  0x6f   : > { %1458 = vmatpush3.bf16.msra.mxu1 %v2154_v54 }
  0x70   : > { %1412 = vmatpush3.bf16.msra.mxu0 %v2276_v32  ;;  %974 = vmatprep.subr.bf16.mxu1 %v2562_v45 }
  0x71   : > { %1413 = vmatprep.subr.bf16.mxu0 %v2282_v62 }
  0x72   : > { %927 = vmatmul.mubr.bf16.vlgmr.msra.gmra.mrb[4].mxu1 %v2098_v22  ;;  %v1035_v22 = vpack.c.bf16 %v2225_v27, %v2225_v27 }
  0x73   : > { %975 = vmatpush1.bf16.msra.mxu1 %v1807_v2  ;;  %1348 = vmatprep.mubr.msk.bf16.mxu1 %vm683_vm0, %v2064_v50  ;;  %v2570_v50 = vld [vmem:[#allocation10_spill] sm:$0xff] }
  0x74   : > { %1414 = vmatpush3.bf16.msra.mxu0 %v2292_v61  ;;  %976 = vmatprep.subr.bf16.mxu1 %v2562_v45 }
  0x75   : > { %1421 = vmatprep.subr.bf16.mxu0 %v1801_v0 }
  0x77   : > { %804 = vmatmul.mubr.bf16.vlgmr.msra.gmra.mrb[8].mxu0 %v304_v38  ;;  %977 = vmatpush1.bf16.msra.mxu1 %v1826_v5  ;;  %v1020_v38 = vunpack.c.l.bf16 %v2142_v63  ;;  %v1031_v63 = vpack.c.bf16 %v2575_v55, %v2575_v55 }
  0x78   : > { %1422 = vmatpush3.bf16.msra.mxu0 %v1813_v3  ;;  %978 = vmatprep.subr.bf16.mxu1 %v2562_v45 }
  0x79   : > { %1423 = vmatprep.subr.bf16.mxu0 %v1819_v4  ;;  %886 = vmatprep.mubr.bf16.mxu0 %v1942_v24  ;;  %v2327_v24 = vsub.f32 %v2114_v53, %v1020_v38  ;;  %v2571_v53 = vld [vmem:[#allocation13_spill] sm:$0xff] }
  0x7b   : > { %979 = vmatpush1.bf16.msra.mxu1 %v1843_v8 }
  0x7c   : > { %1424 = vmatpush3.bf16.msra.mxu0 %v1832_v6  ;;  %980 = vmatprep.subr.bf16.mxu1 %v2562_v45 }
  0x7d   : > { %1425 = vmatprep.subr.bf16.mxu0 %v1837_v7 }
  0x7f   : > { %981 = vmatpush1.bf16.msra.mxu1 %v1863_v11 }
  0x80   : > { %1426 = vmatpush3.bf16.msra.mxu0 %v1850_v9  ;;  %982 = vmatprep.subr.bf16.mxu1 %v2562_v45 }
  0x81   : > { %1427 = vmatprep.subr.bf16.mxu0 %v1856_v10 }
  0x83   : > { %983 = vmatpush1.bf16.msra.mxu1 %v1883_v14 }
  0x84   : > { %1428 = vmatpush3.bf16.msra.mxu0 %v1870_v12  ;;  %984 = vmatprep.subr.bf16.mxu1 %v2562_v45 }
  0x85   : > { %1429 = vmatprep.subr.bf16.mxu0 %v1876_v13 }
  0x87   : > { %985 = vmatpush1.bf16.msra.mxu1 %v1902_v17 }
  0x88   : > { %1430 = vmatpush3.bf16.msra.mxu0 %v1890_v15  ;;  %986 = vmatprep.subr.bf16.mxu1 %v2562_v45 }
  0x89   : > { %1431 = vmatprep.subr.bf16.mxu0 %v1896_v16 }
  0x8b   : > { %987 = vmatpush1.bf16.msra.mxu1 %v1925_v20 }
  0x8c   : > { %1432 = vmatpush3.bf16.msra.mxu0 %v1909_v18  ;;  %988 = vmatprep.subr.bf16.mxu1 %v2562_v45 }
  0x8d   : > { %1433 = vmatprep.subr.bf16.mxu0 %v1915_v19 }
  0x8f   : > { %989 = vmatpush1.bf16.msra.mxu1 %v1949_v26 }
  0x90   : > { %1434 = vmatpush3.bf16.msra.mxu0 %v1931_v21  ;;  %990 = vmatprep.subr.bf16.mxu1 %v2562_v45 }
  0x91   : > { %1435 = vmatprep.subr.bf16.mxu0 %v1940_v23 }
  0x93   : > { %991 = vmatpush1.bf16.msra.mxu1 %v1978_v34 }
  0x94   : > { %1436 = vmatpush3.bf16.msra.mxu0 %v1959_v29  ;;  %992 = vmatprep.subr.bf16.mxu1 %v2562_v45 }
  0x95   : > { %1465 = vmatprep.subr.bf16.mxu0 %v2160_v33 }
  0x97   : > { %887 = vmatmul.mubr.bf16.vlgmr.msra.gmra.mrb[12].mxu0 %v1952_v28  ;;  %993 = vmatpush1.bf16.msra.mxu1 %v2005_v39  ;;  %v2572_v28 = vld [vmem:[#allocation14_spill] sm:$0xff] }
  0x98   : > { %1466 = vmatpush3.bf16.msra.mxu0 %v2176_v56  ;;  %994 = vmatprep.subr.bf16.mxu1 %v2562_v45 }
  0x99   : > { %1467 = vmatprep.subr.bf16.mxu0 %v2186_v30  ;;  %966 = vmatprep.mubr.bf16.mxu0 %v2188_v58 }
  0x9b   : > { %995 = vmatpush1.bf16.msra.mxu1 %v2570_v50 }
  0x9c   : > { %1468 = vmatpush3.bf16.msra.mxu0 %v2201_v35  ;;  %996 = vmatprep.subr.bf16.mxu1 %v2562_v45 }
  0x9d   : > { %1469 = vmatprep.subr.bf16.mxu0 %v2208_v36 }
  0x9f   : > { %997 = vmatpush1.bf16.msra.mxu1 %v2571_v53 }
  0xa0   : > { %1470 = vmatpush3.bf16.msra.mxu0 %v2216_v41  ;;  %998 = vmatprep.subr.bf16.mxu1 %v2562_v45 }
  0xa1   : > { %1471 = vmatprep.subr.bf16.mxu0 %v2222_v31 }
  0xa3   : > { %999 = vmatpush1.bf16.msra.mxu1 %v2572_v28 }
  0xa4   : > { %1472 = vmatpush3.bf16.msra.mxu0 %v2232_v44  ;;  %1000 = vmatprep.subr.bf16.mxu1 %v2562_v45 }
  0xa5   : > { %1473 = vmatprep.subr.bf16.mxu0 %v2240_v42 }
  0xa7   : > { %1001 = vmatpush1.bf16.msra.mxu1 %v2089_v59 }
  0xa8   : > { %1474 = vmatpush3.bf16.msra.mxu0 %v2248_v40  ;;  %1002 = vmatprep.subr.bf16.mxu1 %v2562_v45 }
  0xa9   : > { %1475 = vmatprep.subr.bf16.mxu0 %v2254_v49 }
  0xab   : > { %1003 = vmatpush1.bf16.msra.mxu1 %v2573_v57 }
  0xac   : > { %1476 = vmatpush3.bf16.msra.mxu0 %v2262_v51  ;;  %1531 = vmatprep.subr.bf16.mxu1 %v2160_v33 }
  0xad   : > { %1477 = vmatprep.subr.bf16.mxu0 %v2268_v25 }
  0xae   : > { %1007 = vmatmul.mubr.bf16.vlgmr.msra.gmra.mrb[0].mxu1 %v2574_v48 }
  0xaf   : > { %1532 = vmatpush3.bf16.msra.mxu1 %v2176_v56  ;;  %1153 = vmatprep.mubr.bf16.mxu1 %v1035_v22 }
  0xb0   : > { %1478 = vmatpush3.bf16.msra.mxu0 %v2276_v32  ;;  %1533 = vmatprep.subr.bf16.mxu1 %v2186_v30 }
  0xb1   : > { %1479 = vmatprep.subr.bf16.mxu0 %v2282_v62 }
  0xb3   : > { %1534 = vmatpush3.bf16.msra.mxu1 %v2201_v35 }
  0xb4   : > { %1480 = vmatpush3.bf16.msra.mxu0 %v2292_v61  ;;  %1535 = vmatprep.subr.bf16.mxu1 %v2208_v36 }
  0xb5   : > { %1487 = vmatprep.subr.bf16.mxu0 %v1801_v0  ;;  %v1034_v0 = vpack.c.bf16 %v2234_v43, %v2234_v43 }
  0xb7   : > { %967 = vmatmul.mubr.bf16.vlgmr.msra.gmra.mrb[16].mxu0 %v2576_v60  ;;  %1536 = vmatpush3.bf16.msra.mxu1 %v2216_v41 }
  0xb8   : > { %1488 = vmatpush3.bf16.msra.mxu0 %v1813_v3  ;;  %1537 = vmatprep.subr.bf16.mxu1 %v2222_v31  ;;  %v2577_v3 = vld [vmem:[#allocation22_spill] sm:$0xff] }
  0xb9   : > { %1489 = vmatprep.subr.bf16.mxu0 %v1819_v4  ;;  %1073 = vmatprep.mubr.bf16.mxu0 %v1031_v63  ;;  %v1037_v4 = vpack.c.bf16 %v2577_v3, %v2577_v3 }
  0xbb   : > { %1538 = vmatpush3.bf16.msra.mxu1 %v2232_v44 }
  0xbc   : > { %1490 = vmatpush3.bf16.msra.mxu0 %v1832_v6  ;;  %1539 = vmatprep.subr.bf16.mxu1 %v2240_v42  ;;  %v2578_v6 = vld [vmem:[#allocation25_spill] sm:$0xff] }
  0xbd   : > { %1491 = vmatprep.subr.bf16.mxu0 %v1837_v7  ;;  %v1030_v7 = vpack.c.bf16 %v2578_v6, %v2578_v6 }
  0xbf   : > { %1540 = vmatpush3.bf16.msra.mxu1 %v2248_v40 }
  0xc0   : > { %1492 = vmatpush3.bf16.msra.mxu0 %v1850_v9  ;;  %1541 = vmatprep.subr.bf16.mxu1 %v2254_v49  ;;  %v2579_v9 = vld [vmem:[#allocation5_spill] sm:$0xff] }
  0xc1   : > { %1493 = vmatprep.subr.bf16.mxu0 %v1856_v10  ;;  %v2580_v10 = vld [vmem:[#allocation6_spill] sm:$0xff] }
  0xc3   : > { %1542 = vmatpush3.bf16.msra.mxu1 %v2262_v51 }
  0xc4   : > { %1494 = vmatpush3.bf16.msra.mxu0 %v1870_v12  ;;  %1543 = vmatprep.subr.bf16.mxu1 %v2268_v25  ;;  %v2582_v12 = vld [vmem:[#allocation8_spill] sm:$0xff] }
  0xc5   : > { %1495 = vmatprep.subr.bf16.mxu0 %v1876_v13  ;;  %v2583_v13 = vld [vmem:[#allocation9_spill] sm:$0xff] }
  0xc7   : > { %1544 = vmatpush3.bf16.msra.mxu1 %v2276_v32 }
  0xc8   : > { %1496 = vmatpush3.bf16.msra.mxu0 %v1890_v15  ;;  %1545 = vmatprep.subr.bf16.mxu1 %v2282_v62  ;;  %v2584_v15 = vld [vmem:[#allocation11_spill] sm:$0xff] }
  0xc9   : > { %1497 = vmatprep.subr.bf16.mxu0 %v1896_v16  ;;  %v2588_v16 = vld [vmem:[#allocation18_spill] sm:$0xff] }
  0xcb   : > { %1546 = vmatpush3.bf16.msra.mxu1 %v2292_v61 }
  0xcc   : > { %1498 = vmatpush3.bf16.msra.mxu0 %v1909_v18  ;;  %1161 = vmatprep.subr.bf16.mxu1 %v2562_v45  ;;  %v2590_v18 = vld [vmem:[#allocation21_spill] sm:$0xff] }
  0xcd   : > { %1499 = vmatprep.subr.bf16.mxu0 %v1915_v19  ;;  %v2591_v19 = vld [vmem:[#allocation23_spill] sm:$0xff] }
  0xce   : > { %1154 = vmatmul.mubr.bf16.vlgmr.msra.gmra.mrb[8].mxu1 %v1034_v0 }
  0xcf   : > { %1162 = vmatpush1.bf16.msra.mxu1 %v1807_v2  ;;  %1349 = vmatprep.mubr.msk.bf16.mxu1 %vm683_vm0, %v1037_v4  ;;  %v1033_v2 = vpack.c.bf16 %v2297_v52, %v2297_v52 }
  0xd0   : > { %1500 = vmatpush3.bf16.msra.mxu0 %v1931_v21  ;;  %1163 = vmatprep.subr.bf16.mxu1 %v2562_v45  ;;  %v1036_v21 = vpack.c.bf16 %v2327_v24, %v2327_v24 }
  0xd1   : > { %1501 = vmatprep.subr.bf16.mxu0 %v1940_v23 }
  0xd3   : > { %1164 = vmatpush1.bf16.msra.mxu1 %v1826_v5  ;;  %v2581_v5 = vld [vmem:[#allocation7_spill] sm:$0xff] }
  0xd4   : > { %1502 = vmatpush3.bf16.msra.mxu0 %v1959_v29  ;;  %1165 = vmatprep.subr.bf16.mxu1 %v2562_v45 }
  0xd5   : > { %1509 = vmatprep.subr.bf16.mxu0 %v2579_v9 }
  0xd7   : > { %1166 = vmatpush1.bf16.msra.mxu1 %v1843_v8  ;;  %1074 = vmatmul.mubr.bf16.vlgmr.msra.gmra.mrb[20].mxu0 %v1030_v7  ;;  %v2585_v8 = vld [vmem:[#allocation12_spill] sm:$0xff] }
  0xd8   : > { %1510 = vmatpush3.bf16.msra.mxu0 %v2580_v10  ;;  %1167 = vmatprep.subr.bf16.mxu1 %v2562_v45 }
  0xd9   : > { %1511 = vmatprep.subr.bf16.mxu0 %v2581_v5  ;;  %1113 = vmatprep.mubr.bf16.mxu0 %v1033_v2 }
  0xdb   : > { %1168 = vmatpush1.bf16.msra.mxu1 %v1863_v11  ;;  %v2586_v11 = vld [vmem:[#allocation15_spill] sm:$0xff] }
  0xdc   : > { %1512 = vmatpush3.bf16.msra.mxu0 %v2582_v12  ;;  %1169 = vmatprep.subr.bf16.mxu1 %v2562_v45 }
  0xdd   : > { %1513 = vmatprep.subr.bf16.mxu0 %v2583_v13 }
  0xdf   : > { %1170 = vmatpush1.bf16.msra.mxu1 %v1883_v14  ;;  %v2587_v14 = vld [vmem:[#allocation17_spill] sm:$0xff] }
  0xe0   : > { %1514 = vmatpush3.bf16.msra.mxu0 %v2584_v15  ;;  %1171 = vmatprep.subr.bf16.mxu1 %v2562_v45 }
  0xe1   : > { %1515 = vmatprep.subr.bf16.mxu0 %v2585_v8 }
  0xe3   : > { %1172 = vmatpush1.bf16.msra.mxu1 %v1902_v17  ;;  %v2589_v17 = vld [vmem:[#allocation19_spill] sm:$0xff] }
  0xe4   : > { %1516 = vmatpush3.bf16.msra.mxu0 %v2050_v46  ;;  %1173 = vmatprep.subr.bf16.mxu1 %v2562_v45 }
  0xe5   : > { %1517 = vmatprep.subr.bf16.mxu0 %v2056_v47 }
  0xe7   : > { %1174 = vmatpush1.bf16.msra.mxu1 %v1925_v20  ;;  %v1032_v20 = vpack.c.bf16 %v2303_v1, %v2303_v1 }
  0xe8   : > { %1518 = vmatpush3.bf16.msra.mxu0 %v2586_v11  ;;  %1175 = vmatprep.subr.bf16.mxu1 %v2562_v45 }
  0xe9   : > { %1519 = vmatprep.subr.bf16.mxu0 %v2587_v14 }
  0xeb   : > { %1176 = vmatpush1.bf16.msra.mxu1 %v1949_v26 }
  0xec   : > { %1520 = vmatpush3.bf16.msra.mxu0 %v2588_v16  ;;  %1177 = vmatprep.subr.bf16.mxu1 %v2562_v45 }
  0xed   : > { %1521 = vmatprep.subr.bf16.mxu0 %v2589_v17 }
  0xef   : > { %1178 = vmatpush1.bf16.msra.mxu1 %v1978_v34 }
  0xf0   : > { %1522 = vmatpush3.bf16.msra.mxu0 %v2590_v18  ;;  %1179 = vmatprep.subr.bf16.mxu1 %v2562_v45 }
  0xf1   : > { %1523 = vmatprep.subr.bf16.mxu0 %v2591_v19 }
  0xf3   : > { %1180 = vmatpush1.bf16.msra.mxu1 %v2005_v39 }
  0xf4   : > { %1524 = vmatpush3.bf16.msra.mxu0 %v2154_v54  ;;  %1181 = vmatprep.subr.bf16.mxu1 %v2562_v45 }
  0xf7   : > { %1114 = vmatmul.mubr.bf16.vlgmr.msra.gmra.mrb[24].mxu0 %v1032_v20  ;;  %1182 = vmatpush1.bf16.msra.mxu1 %v2570_v50 }
  0xf8   : > { %1183 = vmatprep.subr.bf16.mxu1 %v2562_v45 }
  0xfb   : > { %1184 = vmatpush1.bf16.msra.mxu1 %v2571_v53 }
  0xfc   : > { %1185 = vmatprep.subr.bf16.mxu1 %v2562_v45 }
  0xff   : > { %1186 = vmatpush1.bf16.msra.mxu1 %v2572_v28 }
 0x100   : > { %1187 = vmatprep.subr.bf16.mxu1 %v2562_v45 }
 0x103   : > { %1188 = vmatpush1.bf16.msra.mxu1 %v2089_v59 }
 0x104   : > { %1189 = vmatprep.subr.bf16.mxu1 %v2562_v45 }
 0x107   : > { %1190 = vmatpush1.bf16.msra.mxu1 %v2573_v57 }
 0x10a   : > { %1194 = vmatmul.mubr.bf16.vlgmr.msra.gmra.mrb[0].mxu1 %v1036_v21  ;;  %v1371_v23 = vpop.f32.mrb[0].mxu0 }
 0x10b   : > { %v1372_v26 = vpop.f32.mrb[1].mxu0 }
 0x10c   : > { %v1373_v29 = vadd.f32 %v1372_v26, %v1371_v23  ;;  %v1374_v34 = vpop.f32.mrb[2].mxu0 }
 0x10d   : > { %v1375_v36 = vpop.f32.mrb[3].mxu0 }
 0x12a   : > { %v1393_v39 = vpop.f32.mrb[4].mxu0 }
 0x12b   : > { %v1394_v41 = vpop.f32.mrb[5].mxu0 }
 0x12c   : > { %v1395_v43 = vadd.f32 %v1394_v41, %v1393_v39  ;;  %v1396_v44 = vpop.f32.mrb[6].mxu0 }
 0x12d   : > { %v1397_v46 = vpop.f32.mrb[7].mxu0 }
 0x12e   : > { %v766_v47 = vadd.f32 %v1395_v43, %v1373_v29 }
 0x145   : > { %v1459_v52 = vpop.f32.mrb[4].mxu1 }
 0x146   : > { %v1460_v59 = vpop.f32.mrb[5].mxu1 }
 0x147   : > { %v1461_v45 = vadd.f32 %v1460_v59, %v1459_v52  ;;  %v1462_v62 = vpop.f32.mrb[6].mxu1 }
 0x148   : > { %v1463_v32 = vpop.f32.mrb[7].mxu1 }
 0x14a   : > { %v1415_v61 = vpop.f32.mrb[8].mxu0 }
 0x14b   : > { %v1416_v54 = vpop.f32.mrb[9].mxu0 }
 0x14c   : > { %v1417_v33 = vadd.f32 %v1416_v54, %v1415_v61  ;;  %v1418_v37 = vpop.f32.mrb[10].mxu0 }
 0x14d   : > { %v1419_v56 = vpop.f32.mrb[11].mxu0 }
 0x14e   : > { %v806_v30 = vadd.f32 %v1417_v33, %v766_v47 }
 0x16a   : > { %v1437_v58 = vpop.f32.mrb[12].mxu0 }
 0x16b   : > { %v1438_v35 = vpop.f32.mrb[13].mxu0 }
 0x16c   : > { %v1439_v31 = vadd.f32 %v1438_v35, %v1437_v58  ;;  %v1440_v27 = vpop.f32.mrb[14].mxu0 }
 0x16d   : > { %v1441_v42 = vpop.f32.mrb[15].mxu0 }
 0x16e   : > { %v1553_v40 = vadd.f32 %v1439_v31, %v806_v30 }
 0x170   : > { %v1554_v49 = vadd.f32 %v1553_v40, %v1461_v45 }
 0x18a   : > { %v1481_v51 = vpop.f32.mrb[16].mxu0 }
 0x18b   : > { %v1482_v25 = vpop.f32.mrb[17].mxu0 }
 0x18c   : > { %v1483_v1 = vadd.f32 %v1482_v25, %v1481_v51  ;;  %v1484_v38 = vpop.f32.mrb[18].mxu0 }
 0x18d   : > { %v1485_v24 = vpop.f32.mrb[19].mxu0 }
 0x18e   : > { %v1555_v50 = vadd.f32 %v1554_v49, %v1483_v1 }
 0x1a1   : > { %v1547_v53 = vpop.f32.mrb[8].mxu1 }
 0x1a2   : > { %v1548_v28 = vpop.f32.mrb[9].mxu1 }
 0x1a3   : > { %v1549_v57 = vadd.f32 %v1548_v28, %v1547_v53  ;;  %v1550_v22 = vpop.f32.mrb[10].mxu1 }
 0x1a4   : > { %v1551_v48 = vpop.f32.mrb[11].mxu1 }
 0x1aa   : > { %v1503_v55 = vpop.f32.mrb[20].mxu0 }
 0x1ab   : > { %v1504_v63 = vpop.f32.mrb[21].mxu0 }
 0x1ac   : > { %v1505_v60 = vadd.f32 %v1504_v63, %v1503_v55  ;;  %v1506_v0 = vpop.f32.mrb[22].mxu0 }
 0x1ad   : > { %v1507_v3 = vpop.f32.mrb[23].mxu0 }
 0x1ca   : > { %v1525_v4 = vpop.f32.mrb[24].mxu0 }
 0x1cb   : > { %v1526_v6 = vpop.f32.mrb[25].mxu0 }
 0x1cc   : > { %v1527_v7 = vadd.f32 %v1526_v6, %v1525_v4  ;;  %v1528_v9 = vpop.f32.mrb[26].mxu0 }
 0x1cd   : > { %v1529_v2 = vpop.f32.mrb[27].mxu0 }
 0x1ce   : > { %v1116_v10 = vadd.f32 %v1527_v7, %v1505_v60 }
 0x1d0   : > { %v1156_v5 = vadd.f32 %v1549_v57, %v1116_v10 }
 0x1d2   : > { %v1556_v12 = vadd.f32 %v1555_v50, %v1156_v5 }
 0x1dd   : > { %v1195_v13 = vpop.f32.mrb[0].mxu1 }
 0x1de   : > { %v1557_v15 = vadd.f32 %v1556_v12, %v1195_v13  ;;  %v1197_v8 = vpop.f32.mrb[1].mxu1 }
 0x1df   : > { %v1198_v11 = vpop.f32.mrb[2].mxu1 }
 0x1e0   : > { %v1199_v14 = vpop.f32.mrb[3].mxu1  ;;  %1203 = vst.msk [vmem:[%s136_s24] sm:$0xff] %vm1202_vm2, %v1557_v15 }
 0x1e1   : > { %1682 = shalt.err (!%p1679_p3)
}
 0x1e2   : > { %s1683_s6 = scalar_lea.hbm %s2475_s29, 128  ;;  %s1687_s8 = scalar_lea.hbm %s2519_s2, 256 }
 0x1e3   : > { %p1684_p4 = scmp.ne.s32.totalorder %s2475_s29, %s1683_s6  ;;  %p1688_p9 = scmp.lt.u32.totalorder %s2475_s29, %s2519_s2 }
 0x1e4   : > { %p1689_p10 = scmp.lt.u32.totalorder %s1687_s8, %s1683_s6  ;;  %p1691_p12 = scmp.lt.u32.totalorder %s1683_s6, %s2475_s29 }
 0x1e5   : > { %p1685_p7 = pnand %p1684_p4, %p1788_p5 }
 0x1e6   : > { %p1690_p11 = por %p1689_p10, %p1688_p9 }
 0x1e7   : > { %p1686_p8 = pneg %p1685_p7 }
 0x1e8   : > { %p1692_p13 = por %p1691_p12, %p1690_p11 }
 0x1ea   : > { %p1693_p0 = pnand %p1692_p13, %p1686_p8 }
 0x1ec   : > { %1696 = shalt.err (!%p1693_p0)
}
 0x1ed   : > { %1566 = dma.vmem_to_hbm [thread:$0]  (%p1788_p5), %s2477_s26, 128, %s2475_s29, %s1205_s13  }
 0x1ee PF: > { %p1572_p1 = scmp.ge.s32.totalorder %s1731_s12, 2  ;;  %s1230_s17 = sand.u32 1, %s1719_s9  }
 0x1ef   : > { %s1231_s21 = scalar_lea.sflag [#allocation3], %s1230_s17 }
 0x1f0   : > { %p1569_p2 = pnand %p1572_p1, %p1792_p6 }
 0x1f2   : > { %1714 = dma.done.wait (!%p1569_p2), %s1231_s21, 128  }
 0x1f3   : > { %1716 = vsyncadd (!%p1569_p2), %s1231_s21, 4294967168  ;;  %p12_p3 = scmp.ge.s32.totalorder %s1775_s15, 4   ;;  %s2592_s9 = smov %s1723_s10 }
 0x1f4   : > { %s2593_s10 = smov %s1727_s11  ;;  %s2594_s11 = smov %s1786_s18 }
 0x1f5   : > { %s2595_s12 = smov %s1775_s15  ;;  %14 = sbr.rel (!%p12_p3) target bundleno = 3 (0x3), region = 63 }
 0x1fc   :  { %1236 = vsyncpa [#allocation3], 1 }
 0x1fd   :  { %1238 = vsyncpa [#allocation3 + $0x1], 1 }

</bundles_post_ra>
